<compile_context>
chip_gen: v7x
topology: tpu7x:2x2x1
jax: 0.10.0
libtpu: 0.0.40
codegen_flags: <defaults>
</compile_context>

<pallas_src>
import jax
import jax.numpy as jnp
from jax.experimental import pallas as pl
from jax.experimental.pallas import tpu as pltpu

LN_EPS = 1e-5  # torch.nn.LayerNorm default


def _fused_head_kernel(text_ref, w1t_ref, b1_ref, g_ref, beta_ref,
                       w2_ref, b2_ref, w3_ref, b3_ref, out_ref):
    # Fusion Linear: text @ W1[:H] + (vis @ W1[H:] + b1)  [second term prefused
    # into b1_ref in the wrapper].  bf16 operands, f32 accumulation.
    h = jnp.dot(text_ref[...], w1t_ref[...],
                preferred_element_type=jnp.float32)                  # (tile, 1024)
    h = h + b1_ref[...]
    h = jnp.maximum(h, 0.0)                                          # ReLU

    # LayerNorm(1024): one-pass stats, f32 math, rsqrt on EUP.
    h1 = h.shape[-1]
    s1 = jnp.sum(h, axis=-1, keepdims=True)
    s2 = jnp.sum(h * h, axis=-1, keepdims=True)
    mu = s1 * (1.0 / h1)
    var = jnp.maximum(s2 * (1.0 / h1) - mu * mu, 0.0)
    h = (h - mu) * jax.lax.rsqrt(var + LN_EPS)
    h = h * g_ref[...] + beta_ref[...]
    # TODO(synk): Dropout(0.5) is identity in eval mode; training-mode RNG dropout omitted.

    # __linear: 1024 -> 224 (padded to 256), ReLU.
    x = jnp.dot(h.astype(jnp.bfloat16), w2_ref[...],
                preferred_element_type=jnp.float32) + b2_ref[...]
    x = jnp.maximum(x, 0.0)

    # __out_layer: 224 -> num_labels (padded to lane-dense multiple of 128).
    out_ref[...] = (jnp.dot(x.astype(jnp.bfloat16), w3_ref[...],
                            preferred_element_type=jnp.float32)
                    + b3_ref[...]).astype(out_ref.dtype)


def _pick_seq_tile(S):
    for t in (512, 256, 128, 64, 32, 16, 8):
        if S % t == 0:
            return t
    return S  # ragged S: single full-extent block


def _pad_cols(a, to):
    pad = to - a.shape[-1]
    return a if pad == 0 else jnp.pad(a, [(0, 0)] * (a.ndim - 1) + [(0, pad)])


def _pad_rows(a, to):
    pad = to - a.shape[0]
    return a if pad == 0 else jnp.pad(a, [(0, pad)] + [(0, 0)] * (a.ndim - 1))


def combined_model_head(text, visual_row, params, *, seq_tile=None):
    """text: (S, H_text) f32; visual_row: (1, D_vis) f32 -> (S, num_labels) f32."""
    S, H = text.shape
    w1, b1, gamma, beta, w2, b2, w3, b3 = params
    H1 = w1.shape[1]               # 1024
    H2 = w2.shape[1]               # 224
    L = w3.shape[1]                # num_labels
    H2p = pl.cdiv(H2, 128) * 128   # 256
    Lp = pl.cdiv(L, 128) * 128     # lane-dense output width

    # Split fusion weight along the concat axis; fold the broadcast visual
    # contribution (one row) plus bias into a single effective bias (f32, once).
    w1t = w1[:H].astype(jnp.bfloat16)
    b1_eff = (visual_row.astype(jnp.float32) @ w1[H:].astype(jnp.float32)
              + b1.reshape(1, H1)).astype(jnp.float32)               # (1, 1024)
    g_r = gamma.reshape(1, H1).astype(jnp.float32)
    be_r = beta.reshape(1, H1).astype(jnp.float32)
    w2p = _pad_cols(w2, H2p).astype(jnp.bfloat16)
    b2p = _pad_cols(b2.reshape(1, H2), H2p).astype(jnp.float32)
    w3p = _pad_cols(_pad_rows(w3, H2p), Lp).astype(jnp.bfloat16)
    b3p = _pad_cols(b3.reshape(1, L), Lp).astype(jnp.float32)
    text_bf = text.astype(jnp.bfloat16)

    if seq_tile is None:
        seq_tile = _pick_seq_tile(S)
    assert S % seq_tile == 0
    n_tiles = S // seq_tile

    full = lambda i: (0, 0)

    # VMEM budget with headroom (v7x: 64 MiB physical / 32 MiB default scoped).
    weight_bytes = 2 * 2 * (w1t.size + w2p.size + w3p.size)          # bf16, dbl-buffered
    act_bytes = 2 * seq_tile * (H * 2 + Lp * 4) + 4 * seq_tile * (2 * H1 + H2p)
    vmem_limit = int(min(max(2 * (weight_bytes + act_bytes), 32 * 2**20), 48 * 2**20))

    out = pl.pallas_call(
        _fused_head_kernel,
        out_shape=jax.ShapeDtypeStruct((S, Lp), jnp.float32),
        grid_spec=pltpu.PrefetchScalarGridSpec(
            num_scalar_prefetch=0,
            grid=(n_tiles,),
            in_specs=[
                pl.BlockSpec((seq_tile, H), lambda i: (i, 0)),   # text rows (pipelined)
                pl.BlockSpec((H, H1), full),                     # W1[:H]   (bf16)
                pl.BlockSpec((1, H1), full),                     # b1 + visual contribution
                pl.BlockSpec((1, H1), full),                     # LN gamma
                pl.BlockSpec((1, H1), full),                     # LN beta
                pl.BlockSpec((H1, H2p), full),                   # W2 padded (bf16)
                pl.BlockSpec((1, H2p), full),                    # b2 padded
                pl.BlockSpec((H2p, Lp), full),                   # W3 padded (bf16)
                pl.BlockSpec((1, Lp), full),                     # b3 padded
            ],
            out_specs=pl.BlockSpec((seq_tile, Lp), lambda i: (i, 0)),
        ),
        compiler_params=pltpu.CompilerParams(
            dimension_semantics=(("parallel",) if n_tiles >= 8 else ("arbitrary",)),
            vmem_limit_bytes=vmem_limit),
    )(text_bf, w1t, b1_eff, g_r, be_r, w2p, b2p, w3p, b3p)

    return out[:, :L]


def combined_model_forward(visual_out, text_last_hidden, params):
    """Mirrors CombinedModel.forward starting from the backbone outputs.

    visual_out:        (D_vis,)        == self.visual_model(visual_feats)
    text_last_hidden:  (1, S, H_text)  == self.text_model(**text_feats).last_hidden_state
    returns:           (1, S, num_labels)
    """
    B, S, H = text_last_hidden.shape
    assert B == 1, "module broadcasts a single visual vector over seq; batch=1"
    out = combined_model_head(text_last_hidden[0],
                              visual_out.reshape(1, -1), params)
    return out[None]  # (1, S, num_labels)


def reference_forward(visual_out, text_last_hidden, params):
    """Pure-JAX f32 reference of the PyTorch forward (eval mode)."""
    w1, b1, gamma, beta, w2, b2, w3, b3 = params
    S = text_last_hidden.shape[1]
    vis = jnp.broadcast_to(visual_out[None, :], (S, visual_out.shape[0]))
    combined = jnp.concatenate([text_last_hidden[0], vis], axis=-1)
    h = jnp.maximum(combined @ w1 + b1, 0.0)
    mu = jnp.mean(h, axis=-1, keepdims=True)
    var = jnp.mean(jnp.square(h - mu), axis=-1, keepdims=True)
    h = (h - mu) / jnp.sqrt(var + LN_EPS) * gamma + beta
    x = jnp.maximum(h @ w2 + b2, 0.0)
    return (x @ w3 + b3)[None]


def init_params(key, d_comb, num_labels):
    ks = jax.random.split(key, 6)
    # Weights stored (in_features, out_features); biases 1-D like torch.
    w1 = jax.random.normal(ks[0], (d_comb, 1024), jnp.float32) * 0.02
    b1 = jnp.zeros((1024,), jnp.float32)
    gamma = jnp.ones((1024,), jnp.float32)
    beta = jnp.zeros((1024,), jnp.float32)
    w2 = jax.random.normal(ks[1], (1024, 224), jnp.float32) * 0.02
    b2 = jax.random.normal(ks[2], (224,), jnp.float32) * 0.01
    w3 = jax.random.normal(ks[3], (224, num_labels), jnp.float32) * 0.02
    b3 = jax.random.normal(ks[4], (num_labels,), jnp.float32) * 0.01
    # NOTE: self.__connector (Linear(d_comb, 2911)) is never used in forward -> not created.
    return (w1, b1, gamma, beta, w2, b2, w3, b3)


if __name__ == "__main__":
    # Small shapes: text hidden=32, visual output_size=64, seq=8, num_labels=5.
    key = jax.random.PRNGKey(0)
    k_vis, k_txt, k_par = jax.random.split(key, 3)

    D_vis, H_text, S, num_labels = 64, 32, 8, 5
    # TODO(synk): visual_model / text_model are external submodules; their
    # backbone forward passes are not reimplemented — we start from their outputs.
    visual_out = jax.random.normal(k_vis, (D_vis,), jnp.float32)
    text_last_hidden = jax.random.normal(k_txt, (1, S, H_text), jnp.float32)

    params = init_params(k_par, H_text + D_vis, num_labels)

    out = combined_model_forward(visual_out, text_last_hidden, params)
    out = jax.block_until_ready(out)

    ref = reference_forward(visual_out, text_last_hidden, params)
    assert out.shape == (1, S, num_labels), out.shape
    # bf16 matmul operands vs. f32 reference -> loosened tolerance.
    assert jnp.allclose(out, ref, rtol=2e-2, atol=2e-2), "mismatch vs reference"
    print("KERNEL_OK")
</pallas_src>

<mosaic_0001>
module attributes {stable_mosaic.version = 11 : i64} {
  func.func @_fused_head_kernel(%arg0: i32, %arg1: memref<8x32xbf16, #tpu.memory_space<vmem>>, %arg2: memref<32x1024xbf16, #tpu.memory_space<vmem>>, %arg3: memref<1x1024xf32, #tpu.memory_space<vmem>>, %arg4: memref<1x1024xf32, #tpu.memory_space<vmem>>, %arg5: memref<1x1024xf32, #tpu.memory_space<vmem>>, %arg6: memref<1024x256xbf16, #tpu.memory_space<vmem>>, %arg7: memref<1x256xf32, #tpu.memory_space<vmem>>, %arg8: memref<256x128xbf16, #tpu.memory_space<vmem>>, %arg9: memref<1x128xf32, #tpu.memory_space<vmem>>, %arg10: memref<8x128xf32, #tpu.memory_space<vmem>>) attributes {dimension_semantics = [#tpu.dimension_semantics<arbitrary>], iteration_bounds = array<i64: 1>, scalar_prefetch = 0 : i64, scratch_operands = 0 : i64, tpu.core_type = #tpu.core_type<tc>, window_params = [{transform_indices = @transform_0, window_bounds = array<i64: 8, 32>}, {pipeline_mode = #tpu.pipeline_mode<synchronous>, transform_indices = @transform_1, window_bounds = array<i64: 32, 1024>}, {pipeline_mode = #tpu.pipeline_mode<synchronous>, transform_indices = @transform_2, window_bounds = array<i64: 1, 1024>}, {pipeline_mode = #tpu.pipeline_mode<synchronous>, transform_indices = @transform_3, window_bounds = array<i64: 1, 1024>}, {pipeline_mode = #tpu.pipeline_mode<synchronous>, transform_indices = @transform_4, window_bounds = array<i64: 1, 1024>}, {pipeline_mode = #tpu.pipeline_mode<synchronous>, transform_indices = @transform_5, window_bounds = array<i64: 1024, 256>}, {pipeline_mode = #tpu.pipeline_mode<synchronous>, transform_indices = @transform_6, window_bounds = array<i64: 1, 256>}, {pipeline_mode = #tpu.pipeline_mode<synchronous>, transform_indices = @transform_7, window_bounds = array<i64: 256, 128>}, {pipeline_mode = #tpu.pipeline_mode<synchronous>, transform_indices = @transform_8, window_bounds = array<i64: 1, 128>}, {transform_indices = @transform_9, window_bounds = array<i64: 8, 128>}]} {
    %c0 = arith.constant 0 : index
    %c0_0 = arith.constant 0 : index
    %0 = vector.load %arg1[%c0, %c0_0] : memref<8x32xbf16, #tpu.memory_space<vmem>>, vector<8x32xbf16>
    %c0_1 = arith.constant 0 : index
    %c0_2 = arith.constant 0 : index
    %1 = vector.load %arg2[%c0_1, %c0_2] : memref<32x1024xbf16, #tpu.memory_space<vmem>>, vector<32x1024xbf16>
    %cst = arith.constant dense<0.000000e+00> : vector<8x1024xf32>
    %2 = tpu.matmul %0, %1, %cst {dimension_numbers = #tpu.dot_dimension_numbers<[1], [0], [0], [1], [0, 0, 1, 1], [], []>} : vector<8x32xbf16>, vector<32x1024xbf16>, vector<8x1024xf32> -> vector<8x1024xf32>
    %c0_3 = arith.constant 0 : index
    %c0_4 = arith.constant 0 : index
    %3 = vector.load %arg3[%c0_3, %c0_4] : memref<1x1024xf32, #tpu.memory_space<vmem>>, vector<1x1024xf32>
    %4 = vector.broadcast %3 : vector<1x1024xf32> to vector<8x1024xf32>
    %5 = arith.addf %2, %4 : vector<8x1024xf32>
    %cst_5 = arith.constant 0.000000e+00 : f32
    %6 = vector.broadcast %cst_5 : f32 to vector<8x1024xf32>
    %7 = arith.maximumf %5, %6 : vector<8x1024xf32>
    %cst_6 = arith.constant dense<0.000000e+00> : vector<8xf32>
    %8 = vector.multi_reduction <add>, %7, %cst_6 [1] : vector<8x1024xf32> to vector<8xf32>
    %9 = vector.shape_cast %8 : vector<8xf32> to vector<8x1xf32>
    %10 = arith.mulf %7, %7 : vector<8x1024xf32>
    %cst_7 = arith.constant dense<0.000000e+00> : vector<8xf32>
    %11 = vector.multi_reduction <add>, %10, %cst_7 [1] : vector<8x1024xf32> to vector<8xf32>
    %12 = vector.shape_cast %11 : vector<8xf32> to vector<8x1xf32>
    %cst_8 = arith.constant 9.765625E-4 : f32
    %13 = vector.broadcast %cst_8 : f32 to vector<8x1xf32>
    %14 = arith.mulf %9, %13 : vector<8x1xf32>
    %cst_9 = arith.constant 9.765625E-4 : f32
    %15 = vector.broadcast %cst_9 : f32 to vector<8x1xf32>
    %16 = arith.mulf %12, %15 : vector<8x1xf32>
    %17 = arith.mulf %14, %14 : vector<8x1xf32>
    %18 = arith.subf %16, %17 : vector<8x1xf32>
    %cst_10 = arith.constant 0.000000e+00 : f32
    %19 = vector.broadcast %cst_10 : f32 to vector<8x1xf32>
    %20 = arith.maximumf %18, %19 : vector<8x1xf32>
    %21 = vector.broadcast %14 : vector<8x1xf32> to vector<8x1024xf32>
    %22 = arith.subf %7, %21 : vector<8x1024xf32>
    %cst_11 = arith.constant 9.99999974E-6 : f32
    %23 = vector.broadcast %cst_11 : f32 to vector<8x1xf32>
    %24 = arith.addf %20, %23 : vector<8x1xf32>
    %25 = math.rsqrt %24 : vector<8x1xf32>
    %26 = vector.broadcast %25 : vector<8x1xf32> to vector<8x1024xf32>
    %27 = arith.mulf %22, %26 : vector<8x1024xf32>
    %c0_12 = arith.constant 0 : index
    %c0_13 = arith.constant 0 : index
    %28 = vector.load %arg4[%c0_12, %c0_13] : memref<1x1024xf32, #tpu.memory_space<vmem>>, vector<1x1024xf32>
    %29 = vector.broadcast %28 : vector<1x1024xf32> to vector<8x1024xf32>
    %30 = arith.mulf %27, %29 : vector<8x1024xf32>
    %c0_14 = arith.constant 0 : index
    %c0_15 = arith.constant 0 : index
    %31 = vector.load %arg5[%c0_14, %c0_15] : memref<1x1024xf32, #tpu.memory_space<vmem>>, vector<1x1024xf32>
    %32 = vector.broadcast %31 : vector<1x1024xf32> to vector<8x1024xf32>
    %33 = arith.addf %30, %32 : vector<8x1024xf32>
    %34 = arith.truncf %33 : vector<8x1024xf32> to vector<8x1024xbf16>
    %c0_16 = arith.constant 0 : index
    %c0_17 = arith.constant 0 : index
    %35 = vector.load %arg6[%c0_16, %c0_17] : memref<1024x256xbf16, #tpu.memory_space<vmem>>, vector<1024x256xbf16>
    %cst_18 = arith.constant dense<0.000000e+00> : vector<8x256xf32>
    %36 = tpu.matmul %34, %35, %cst_18 {dimension_numbers = #tpu.dot_dimension_numbers<[1], [0], [0], [1], [0, 0, 1, 1], [], []>} : vector<8x1024xbf16>, vector<1024x256xbf16>, vector<8x256xf32> -> vector<8x256xf32>
    %c0_19 = arith.constant 0 : index
    %c0_20 = arith.constant 0 : index
    %37 = vector.load %arg7[%c0_19, %c0_20] : memref<1x256xf32, #tpu.memory_space<vmem>>, vector<1x256xf32>
    %38 = vector.broadcast %37 : vector<1x256xf32> to vector<8x256xf32>
    %39 = arith.addf %36, %38 : vector<8x256xf32>
    %cst_21 = arith.constant 0.000000e+00 : f32
    %40 = vector.broadcast %cst_21 : f32 to vector<8x256xf32>
    %41 = arith.maximumf %39, %40 : vector<8x256xf32>
    %42 = arith.truncf %41 : vector<8x256xf32> to vector<8x256xbf16>
    %c0_22 = arith.constant 0 : index
    %c0_23 = arith.constant 0 : index
    %43 = vector.load %arg8[%c0_22, %c0_23] : memref<256x128xbf16, #tpu.memory_space<vmem>>, vector<256x128xbf16>
    %cst_24 = arith.constant dense<0.000000e+00> : vector<8x128xf32>
    %44 = tpu.matmul %42, %43, %cst_24 {dimension_numbers = #tpu.dot_dimension_numbers<[1], [0], [0], [1], [0, 0, 1, 1], [], []>} : vector<8x256xbf16>, vector<256x128xbf16>, vector<8x128xf32> -> vector<8x128xf32>
    %c0_25 = arith.constant 0 : index
    %c0_26 = arith.constant 0 : index
    %45 = vector.load %arg9[%c0_25, %c0_26] : memref<1x128xf32, #tpu.memory_space<vmem>>, vector<1x128xf32>
    %46 = vector.broadcast %45 : vector<1x128xf32> to vector<8x128xf32>
    %47 = arith.addf %44, %46 : vector<8x128xf32>
    %c0_27 = arith.constant 0 : index
    %c0_28 = arith.constant 0 : index
    %48 = vector.load %arg10[%c0_27, %c0_28] : memref<8x128xf32, #tpu.memory_space<vmem>>, vector<8x128xf32>
    tpu.vector_store %arg10[%c0_27, %c0_28], %47 {strides = array<i32>} : memref<8x128xf32, #tpu.memory_space<vmem>>, vector<8x128xf32>,
    return
  }
  func.func @transform_0(%arg0: i32) -> (i32, i32) {
    %c0_i32 = arith.constant 0 : i32
    %c0_i32_0 = arith.constant 0 : i32
    return %arg0, %c0_i32 : i32, i32
  }
  func.func @transform_1(%arg0: i32) -> (i32, i32) {
    %c0_i32 = arith.constant 0 : i32
    %c0_i32_0 = arith.constant 0 : i32
    %c0_i32_1 = arith.constant 0 : i32
    return %c0_i32, %c0_i32_0 : i32, i32
  }
  func.func @transform_2(%arg0: i32) -> (i32, i32) {
    %c0_i32 = arith.constant 0 : i32
    %c0_i32_0 = arith.constant 0 : i32
    %c0_i32_1 = arith.constant 0 : i32
    return %c0_i32, %c0_i32_0 : i32, i32
  }
  func.func @transform_3(%arg0: i32) -> (i32, i32) {
    %c0_i32 = arith.constant 0 : i32
    %c0_i32_0 = arith.constant 0 : i32
    %c0_i32_1 = arith.constant 0 : i32
    return %c0_i32, %c0_i32_0 : i32, i32
  }
  func.func @transform_4(%arg0: i32) -> (i32, i32) {
    %c0_i32 = arith.constant 0 : i32
    %c0_i32_0 = arith.constant 0 : i32
    %c0_i32_1 = arith.constant 0 : i32
    return %c0_i32, %c0_i32_0 : i32, i32
  }
  func.func @transform_5(%arg0: i32) -> (i32, i32) {
    %c0_i32 = arith.constant 0 : i32
    %c0_i32_0 = arith.constant 0 : i32
    %c0_i32_1 = arith.constant 0 : i32
    return %c0_i32, %c0_i32_0 : i32, i32
  }
  func.func @transform_6(%arg0: i32) -> (i32, i32) {
    %c0_i32 = arith.constant 0 : i32
    %c0_i32_0 = arith.constant 0 : i32
    %c0_i32_1 = arith.constant 0 : i32
    return %c0_i32, %c0_i32_0 : i32, i32
  }
  func.func @transform_7(%arg0: i32) -> (i32, i32) {
    %c0_i32 = arith.constant 0 : i32
    %c0_i32_0 = arith.constant 0 : i32
    %c0_i32_1 = arith.constant 0 : i32
    return %c0_i32, %c0_i32_0 : i32, i32
  }
  func.func @transform_8(%arg0: i32) -> (i32, i32) {
    %c0_i32 = arith.constant 0 : i32
    %c0_i32_0 = arith.constant 0 : i32
    %c0_i32_1 = arith.constant 0 : i32
    return %c0_i32, %c0_i32_0 : i32, i32
  }
  func.func @transform_9(%arg0: i32) -> (i32, i32) {
    %c0_i32 = arith.constant 0 : i32
    %c0_i32_0 = arith.constant 0 : i32
    return %arg0, %c0_i32 : i32, i32
  }
}

</mosaic_0001>

<bundles_post_ra>
// kernel: tpu_custom_call.1
= control target key start
LH: loop header
LB: loop body
LE: loop exit
PB: predicated region body
PF: predicated region fallthrough
CT: control target
= control target key end

     0   :  { %14 = vsyncpa [#allocation3], 0  ;;  %s2570_s0 = inlined_call_operand.hbm [shape: bf16[8,32], index: 0, kind: input, shape index: {}]   ;;  %s2571_s1 = inlined_call_operand.hbm [shape: bf16[32,1024], index: 1, kind: input, shape index: {}]   ;;  %s2572_s2 = inlined_call_operand.hbm [shape: f32[1,1024], index: 2, kind: input, shape index: {}]   ;;  %s2573_s3 = inlined_call_operand.vmem [shape: f32[1,1024], index: 3, kind: input, shape index: {}]   ;;  %s2574_s4 = inlined_call_operand.hbm [shape: f32[1,1024], index: 4, kind: input, shape index: {}]   ;;  %s2575_s5 = inlined_call_operand.hbm [shape: bf16[1024,256], index: 5, kind: input, shape index: {}]   ;;  %s2576_s6 = inlined_call_operand.vmem [shape: f32[1,256], index: 6, kind: input, shape index: {}]   ;;  %s2577_s7 = inlined_call_operand.hbm [shape: bf16[256,128], index: 7, kind: input, shape index: {}]   ;;  %s2578_s8 = inlined_call_operand.vmem [shape: f32[1,128], index: 8, kind: input, shape index: {}]   ;;  %s2579_s9 = inlined_call_operand.hbm [shape: f32[8,128], index: 9, kind: output, shape index: {}]  }
   0x1   :  { %15 = vsyncpa [#allocation6], 0 }
   0x2   :  { %16 = vsyncpa [#allocation9], 0 }
   0x3   :  { %17 = vsyncpa [#allocation12], 0 }
   0x4   :  { %18 = vsyncpa [#allocation4], 0  ;;  %s2311_s30 = smov [#allocation5]   ;;  %s2147_s13 = scalar_lea.hbm %s2571_s1, 2048 }
   0x5   :  { %s34_s10 = sshll.u32 %s2311_s30, 4  ;;  %p2148_p0 = scmp.ne.s32.totalorder %s2571_s1, %s2147_s13  ;;  %s35_s10 = int_to_ptr.vmem [resolvable:$true] %s34_s10 }
   0x6   :  { %p2151_p1 = scmp.lt.u32.totalorder %s2147_s13, %s2571_s1 }
   0x8   :  { %p2153_p2 = pnand %p2151_p1, %p2148_p0 }
   0xa   :  { %2156 = shalt.err (!%p2153_p2)
}
   0xb   :  { %s2157_s18 = scalar_lea.vmem %s35_s10, 2048  ;;  %p2162_p4 = scmp.lt.s32.totalorder %s35_s10, %s35_s10 }
   0xc   :  { %p2158_p3 = scmp.ne.s32.totalorder %s35_s10, %s2157_s18  ;;  %p2163_p5 = scmp.lt.s32.totalorder %s2157_s18, %s2157_s18 }
   0xe   :  { %p2164_p6 = por %p2163_p5, %p2162_p4 }
  0x10   :  { %p2165_p7 = pnand %p2164_p6, %p2158_p3 }
  0x12   :  { %2168 = shalt.err (!%p2165_p7)
}
  0x13   :  { %s2312_s19 = smov 512   ;;  %s2313_s20 = smov 32  }
  0x14   :  { %40 = dma.hbm_to_vmem [thread:$0]  %s2571_s1, 2048, %s35_s10, [#allocation6], %s2312_s19, %s2312_s19, %s2313_s20  }
  0x15   :  { %s2314_s23 = smov [#allocation8]   ;;  %s2315_s25 = smov [#allocation2]  }
  0x16   :  { %s59_s24 = sshll.u32 %s2314_s23, 4  ;;  %s25_s26 = sshll.u32 %s2315_s25, 4  ;;  %s60_s24 = int_to_ptr.vmem [resolvable:$true] %s59_s24  ;;  %s26_s26 = int_to_ptr.vmem [resolvable:$true] %s25_s26 }
  0x17   :  { %s2169_s29 = scalar_lea.hbm %s2574_s4, 128 }
  0x18   :  { %p2170_p8 = scmp.ne.s32.totalorder %s2574_s4, %s2169_s29  ;;  %p2173_p9 = scmp.lt.u32.totalorder %s2169_s29, %s2574_s4 }
  0x1a   :  { %p2175_p10 = pnand %p2173_p9, %p2170_p8 }
  0x1c   :  { %2178 = shalt.err (!%p2175_p10)
}
  0x1d   :  { %s2179_s1 = scalar_lea.vmem %s60_s24, 128  ;;  %p2184_p12 = scmp.lt.s32.totalorder %s60_s24, %s60_s24 }
  0x1e   :  { %p2180_p11 = scmp.ne.s32.totalorder %s60_s24, %s2179_s1  ;;  %p2185_p13 = scmp.lt.s32.totalorder %s2179_s1, %s2179_s1 }
  0x20   :  { %p2186_p0 = por %p2185_p13, %p2184_p12 }
  0x22   :  { %p2187_p1 = pnand %p2186_p0, %p2180_p11 }
  0x24   :  { %2190 = shalt.err (!%p2187_p1)
}
  0x25   :  { %62 = dma.hbm_to_vmem [thread:$0]  %s2574_s4, 128, %s60_s24, [#allocation9]  }
  0x26   :  { %s2191_s17 = scalar_lea.hbm %s2570_s0, 64 }
  0x27   :  { %p2192_p2 = scmp.ne.s32.totalorder %s2570_s0, %s2191_s17  ;;  %p2195_p3 = scmp.lt.u32.totalorder %s2191_s17, %s2570_s0 }
  0x29   :  { %p2197_p4 = pnand %p2195_p3, %p2192_p2 }
  0x2b   :  { %2200 = shalt.err (!%p2197_p4)
}
  0x2c   :  { %s2201_s22 = scalar_lea.vmem %s26_s26, 64  ;;  %p2206_p6 = scmp.lt.s32.totalorder %s26_s26, %s26_s26 }
  0x2d   :  { %p2202_p5 = scmp.ne.s32.totalorder %s26_s26, %s2201_s22  ;;  %p2207_p7 = scmp.lt.s32.totalorder %s2201_s22, %s2201_s22 }
  0x2f   :  { %p2208_p8 = por %p2207_p7, %p2206_p6 }
  0x31   :  { %p2209_p9 = pnand %p2208_p8, %p2202_p5 }
  0x33   :  { %2212 = shalt.err (!%p2209_p9)
}
  0x34   :  { %28 = dma.hbm_to_vmem [thread:$0]  %s2570_s0, 64, %s26_s26, [#allocation3]  }
  0x35   :  { %s2316_s24 = smov [#allocation7]   ;;  %s2317_s27 = smov [#allocation10]  }
  0x36   :  { %s47_s25 = sshll.u32 %s2316_s24, 4  ;;  %s68_s28 = sshll.u32 %s2317_s27, 4  ;;  %s48_s25 = int_to_ptr.vmem [resolvable:$true] %s47_s25  ;;  %s69_s28 = int_to_ptr.vmem [resolvable:$true] %s68_s28 }
  0x37   :  { %s2213_s11 = scalar_lea.hbm %s2572_s2, 128 }
  0x38   :  { %p2214_p10 = scmp.ne.s32.totalorder %s2572_s2, %s2213_s11  ;;  %p2217_p11 = scmp.lt.u32.totalorder %s2213_s11, %s2572_s2 }
  0x3a   :  { %p2219_p12 = pnand %p2217_p11, %p2214_p10 }
  0x3c   :  { %2222 = shalt.err (!%p2219_p12)
}
  0x3d   :  { %s2223_s0 = scalar_lea.vmem %s48_s25, 128  ;;  %p2228_p0 = scmp.lt.s32.totalorder %s48_s25, %s48_s25 }
  0x3e   :  { %p2224_p13 = scmp.ne.s32.totalorder %s48_s25, %s2223_s0  ;;  %p2229_p1 = scmp.lt.s32.totalorder %s2223_s0, %s2223_s0 }
  0x40   :  { %p2230_p2 = por %p2229_p1, %p2228_p0 }
  0x42   :  { %p2231_p3 = pnand %p2230_p2, %p2224_p13 }
  0x44   :  { %2234 = shalt.err (!%p2231_p3)
}
  0x45   :  { %50 = dma.hbm_to_vmem [thread:$0]  %s2572_s2, 128, %s48_s25, [#allocation6]  }
  0x46   :  { %s2235_s17 = scalar_lea.hbm %s2575_s5, 16384 }
  0x47   :  { %p2236_p4 = scmp.ne.s32.totalorder %s2575_s5, %s2235_s17  ;;  %p2239_p5 = scmp.lt.u32.totalorder %s2235_s17, %s2575_s5 }
  0x49   :  { %p2241_p6 = pnand %p2239_p5, %p2236_p4 }
  0x4b   :  { %2244 = shalt.err (!%p2241_p6)
}
  0x4c   :  { %s2245_s22 = scalar_lea.vmem %s69_s28, 16384  ;;  %p2250_p8 = scmp.lt.s32.totalorder %s69_s28, %s69_s28 }
  0x4d   :  { %p2246_p7 = scmp.ne.s32.totalorder %s69_s28, %s2245_s22  ;;  %p2251_p9 = scmp.lt.s32.totalorder %s2245_s22, %s2245_s22 }
  0x4f   :  { %p2252_p10 = por %p2251_p9, %p2250_p8 }
  0x51   :  { %p2253_p11 = pnand %p2252_p10, %p2246_p7 }
  0x53   :  { %2256 = shalt.err (!%p2253_p11)
}
  0x54   :  { %s2318_s2 = smov 128   ;;  %s2319_s4 = smov 8  }
  0x55   :  { %74 = dma.hbm_to_vmem [thread:$0]  %s2575_s5, 16384, %s69_s28, [#allocation9], %s2318_s2, %s2318_s2, %s2319_s4  }
  0x56   :  { %s2320_s25 = smov [#allocation11]   ;;  %s2257_s11 = scalar_lea.hbm %s2577_s7, 2048 }
  0x57   :  { %s82_s27 = sshll.u32 %s2320_s25, 4  ;;  %p2258_p12 = scmp.ne.s32.totalorder %s2577_s7, %s2257_s11  ;;  %s83_s27 = int_to_ptr.vmem [resolvable:$true] %s82_s27 }
  0x58   :  { %p2261_p13 = scmp.lt.u32.totalorder %s2257_s11, %s2577_s7 }
  0x5a   :  { %p2263_p0 = pnand %p2261_p13, %p2258_p12 }
  0x5c   :  { %2266 = shalt.err (!%p2263_p0)
}
  0x5d   :  { %s2267_s0 = scalar_lea.vmem %s83_s27, 2048  ;;  %p2272_p2 = scmp.lt.s32.totalorder %s83_s27, %s83_s27 }
  0x5e   :  { %p2268_p1 = scmp.ne.s32.totalorder %s83_s27, %s2267_s0  ;;  %p2273_p3 = scmp.lt.s32.totalorder %s2267_s0, %s2267_s0 }
  0x60   :  { %p2274_p4 = por %p2273_p3, %p2272_p2 }
  0x62   :  { %p2275_p5 = pnand %p2274_p4, %p2268_p1 }
  0x64   :  { %2278 = shalt.err (!%p2275_p5)
}
  0x65   :  { %s2321_s5 = smov 64   ;;  %s2322_s28 = smov 4  }
  0x66   :  { %88 = dma.hbm_to_vmem [thread:$0]  %s2577_s7, 2048, %s83_s27, [#allocation12], %s2321_s5, %s2321_s5, %s2322_s28  }
  0x67   :  { %2301 = dma.done.wait [#allocation3], 64  }
  0x68   :  { %2302 = vsyncadd [#allocation3], 4294967232 }
  0x69   :  { %2303 = dma.done.wait [#allocation6], 2176  }
  0x6a   :  { %2304 = vsyncadd [#allocation6], 4294965120 }
  0x6b   :  { %2305 = dma.done.wait [#allocation9], 16512  }
  0x6c   :  { %2306 = vsyncadd [#allocation9], 4294950784 }
  0x6d   :  { %2307 = dma.done.wait [#allocation12], 2048  }
  0x6e   :  { %2308 = vsyncadd [#allocation12], 4294965248  ;;  %v2323_v0 = vmov 0   ;;  %v111_v1 = vld [vmem:[#allocation5] sm:$0xff]  ;;  %v112_v8 = vld [vmem:[#allocation5 + $0x8] sm:$0xff]  ;;  %vm249_vm0 = vcmask 261120  }
  0x6f   :  { %285 = vmatprep.mubr.bf16.mxu0 %v2323_v0  ;;  %v115_v2 = vld [vmem:[#allocation5 + $0x20] sm:$0xff]  ;;  %v116_v9 = vld [vmem:[#allocation5 + $0x28] sm:$0xff]  ;;  %v110_v14 = vld [vmem:[#allocation2] sm:$0xf]  ;;  %s2324_s18 = smov [#allocation13]  }
  0x70   :  { %v119_v3 = vld [vmem:[#allocation5 + $0x40] sm:$0xff]  ;;  %v1725_v4 = vcombine.high %v111_v1, %v115_v2  ;;  %v1724_v5 = vcombine.low %v111_v1, %v115_v2  ;;  %v1727_v11 = vcombine.high %v112_v8, %v116_v9  ;;  %v120_v12 = vld [vmem:[#allocation5 + $0x48] sm:$0xff]  ;;  %v1726_v15 = vcombine.low %v112_v8, %v116_v9  ;;  %v113_v16 = vld [vmem:[#allocation5 + $0x10] sm:$0xff]  ;;  %s1712_s19 = sshll.u32 %s2324_s18, 4  ;;  %s1713_s19 = int_to_ptr.vmem [resolvable:$true] %s1712_s19 }
  0x71   :  { %v123_v6 = vld [vmem:[#allocation5 + $0x60] sm:$0xff]  ;;  %v124_v13 = vld [vmem:[#allocation5 + $0x68] sm:$0xff]  ;;  %v117_v17 = vld [vmem:[#allocation5 + $0x30] sm:$0xff]  ;;  %s2279_s20 = scalar_lea.vmem %s1713_s19, 128  ;;  %p2284_p7 = scmp.lt.s32.totalorder %s1713_s19, %s1713_s19 }
  0x72   :  { %v1733_v7 = vcombine.high %v119_v3, %v123_v6  ;;  %253 = vmatprep.subr.bf16.mxu0 %v1725_v4  ;;  %v1732_v10 = vcombine.low %v119_v3, %v123_v6  ;;  %v1735_v18 = vcombine.high %v120_v12, %v124_v13  ;;  %v1734_v19 = vcombine.low %v120_v12, %v124_v13  ;;  %v121_v20 = vld [vmem:[#allocation5 + $0x50] sm:$0xff]  ;;  %v114_v24 = vld [vmem:[#allocation5 + $0x18] sm:$0xff]  ;;  %v1943_v38 = vld [vmem:[#allocation10 + $0x14] ss:$8 sps:$4 sm:$0xff]   ;;  %p2280_p6 = scmp.ne.s32.totalorder %s1713_s19, %s2279_s20  ;;  %p2285_p8 = scmp.lt.s32.totalorder %s2279_s20, %s2279_s20 }
  0x73   :  { %254 = vmatpush1.bf16.msra.mxu0 %v1724_v5  ;;  %v125_v21 = vld [vmem:[#allocation5 + $0x70] sm:$0xff]  ;;  %v1729_v22 = vcombine.high %v113_v16, %v117_v17  ;;  %v1728_v23 = vcombine.low %v113_v16, %v117_v17  ;;  %v118_v25 = vld [vmem:[#allocation5 + $0x38] sm:$0xff]  ;;  %v1947_v39 = vld [vmem:[#allocation10 + $0x214] ss:$8 sps:$4 sm:$0xff]   ;;  %v129_v5 = vlaneseq }
  0x74   :  { %255 = vmatprep.subr.bf16.mxu0 %v1733_v7  ;;  %v1737_v26 = vcombine.high %v121_v20, %v125_v21  ;;  %v1736_v27 = vcombine.low %v121_v20, %v125_v21  ;;  %v122_v28 = vld [vmem:[#allocation5 + $0x58] sm:$0xff]  ;;  %v1731_v30 = vcombine.high %v114_v24, %v118_v25  ;;  %v1730_v31 = vcombine.low %v114_v24, %v118_v25  ;;  %v1945_v40 = vld [vmem:[#allocation10 + $0x210] ss:$8 sps:$4 sm:$0xff]   ;;  %v1955_v46 = vld [vmem:[#allocation10 + $0x34] ss:$8 sps:$4 sm:$0xff]   ;;  %p2286_p9 = por %p2285_p8, %p2284_p7 }
  0x75   :  { %v126_v29 = vld [vmem:[#allocation5 + $0x78] sm:$0xff]  ;;  %v1948_v41 = vld [vmem:[#allocation10 + $0x10] ss:$8 sps:$4 sm:$0xff]   ;;  %v1959_v47 = vld [vmem:[#allocation10 + $0x234] ss:$8 sps:$4 sm:$0xff]   ;;  %v130_v6 = vshrl.u32 %v129_v5, 7 }
  0x76   :  { %v1739_v32 = vcombine.high %v122_v28, %v126_v29  ;;  %v1738_v33 = vcombine.low %v122_v28, %v126_v29  ;;  %v1937_v34 = vld [vmem:[#allocation10 + $0x4] ss:$8 sps:$4 sm:$0xff]   ;;  %v1939_v35 = vld [vmem:[#allocation10 + $0x200] ss:$8 sps:$4 sm:$0xff]   ;;  %v1957_v48 = vld [vmem:[#allocation10 + $0x230] ss:$8 sps:$4 sm:$0xff]   ;;  %p2287_p10 = pnand %p2286_p9, %p2280_p6 }
  0x77   :  { %256 = vmatpush1.bf16.msra.mxu0 %v1732_v10  ;;  %v1941_v36 = vld [vmem:[#allocation10 + $0x204] ss:$8 sps:$4 sm:$0xff]   ;;  %v1942_v37 = vld [vmem:[#allocation10] ss:$8 sps:$4 sm:$0xff]   ;;  %1362 = vmatprep.subr.bf16.mxu1 %v1937_v34  ;;  %v1960_v49 = vld [vmem:[#allocation10 + $0x30] ss:$8 sps:$4 sm:$0xff]  }
  0x78   :  { %294 = vmatprep.subr.bf16.mxu0 %v1727_v11  ;;  %1363 = vmatpush1.bf16.msra.mxu1 %v1942_v37  ;;  %v1949_v42 = vld [vmem:[#allocation10 + $0x24] ss:$8 sps:$4 sm:$0xff]   ;;  %v1951_v44 = vld [vmem:[#allocation10 + $0x220] ss:$8 sps:$4 sm:$0xff]   ;;  %v1967_v54 = vld [vmem:[#allocation10 + $0x54] ss:$8 sps:$4 sm:$0xff]  }
  0x79   :  { %1364 = vmatprep.subr.bf16.mxu1 %v1943_v38  ;;  %v1953_v43 = vld [vmem:[#allocation10 + $0x224] ss:$8 sps:$4 sm:$0xff]   ;;  %v1954_v45 = vld [vmem:[#allocation10 + $0x20] ss:$8 sps:$4 sm:$0xff]   ;;  %v1971_v55 = vld [vmem:[#allocation10 + $0x254] ss:$8 sps:$4 sm:$0xff]  }
  0x7a   :  { %1740 = vmatmul.mubr.msk.bf16.vlgmr.msra.gmra.mrb[0].mxu0 %vm249_vm0, %v110_v14  ;;  %v1961_v50 = vld [vmem:[#allocation10 + $0x44] ss:$8 sps:$4 sm:$0xff]   ;;  %v1963_v52 = vld [vmem:[#allocation10 + $0x240] ss:$8 sps:$4 sm:$0xff]   ;;  %v1969_v56 = vld [vmem:[#allocation10 + $0x250] ss:$8 sps:$4 sm:$0xff]  }
  0x7b   :  { %295 = vmatpush1.bf16.msra.mxu0 %v1726_v15  ;;  %326 = vmatprep.mubr.bf16.mxu0 %v2323_v0  ;;  %v1965_v51 = vld [vmem:[#allocation10 + $0x244] ss:$8 sps:$4 sm:$0xff]   ;;  %v1966_v53 = vld [vmem:[#allocation10 + $0x40] ss:$8 sps:$4 sm:$0xff]   ;;  %v1972_v57 = vld [vmem:[#allocation10 + $0x50] ss:$8 sps:$4 sm:$0xff]  }
  0x7c   :  { %296 = vmatprep.subr.bf16.mxu0 %v1735_v18  ;;  %1365 = vmatpush1.bf16.msra.mxu1 %v1948_v41  ;;  %v1973_v58 = vld [vmem:[#allocation10 + $0x64] ss:$8 sps:$4 sm:$0xff]   ;;  %v1975_v60 = vld [vmem:[#allocation10 + $0x260] ss:$8 sps:$4 sm:$0xff]   ;;  %v1979_v62 = vld [vmem:[#allocation10 + $0x74] ss:$8 sps:$4 sm:$0xff]  }
  0x7d   :  { %1366 = vmatprep.subr.bf16.mxu1 %v1949_v42  ;;  %v1977_v59 = vld [vmem:[#allocation10 + $0x264] ss:$8 sps:$4 sm:$0xff]   ;;  %v1978_v61 = vld [vmem:[#allocation10 + $0x60] ss:$8 sps:$4 sm:$0xff]   ;;  %v1983_v63 = vld [vmem:[#allocation10 + $0x274] ss:$8 sps:$4 sm:$0xff]  }
  0x7e   :  { %v1984_v1 = vld [vmem:[#allocation10 + $0x70] ss:$8 sps:$4 sm:$0xff]   ;;  %v1985_v2 = vld [vmem:[#allocation10 + $0x84] ss:$8 sps:$4 sm:$0xff]   ;;  %v1987_v4 = vld [vmem:[#allocation10 + $0x280] ss:$8 sps:$4 sm:$0xff]  }
  0x7f   :  { %297 = vmatpush1.bf16.msra.mxu0 %v1734_v19  ;;  %v1989_v3 = vld [vmem:[#allocation10 + $0x284] ss:$8 sps:$4 sm:$0xff]   ;;  %v2451_v7 = vsub.s32 0, %v130_v6  ;;  %v2453_v8 = vsub.s32 1, %v130_v6  ;;  %v127_v9 = vld [vmem:[#allocation7] sm:$0xff]  ;;  %v2459_v17 = vsub.s32 3, %v130_v6 }
  0x80   :  { %335 = vmatprep.subr.bf16.mxu0 %v1729_v22  ;;  %1367 = vmatpush1.bf16.msra.mxu1 %v1954_v45  ;;  %v2469_v29 = vsub.s32 5, %v130_v6  ;;  %v2486_v45 = vsub.s32 6, %v130_v6 }
  0x81   :  { %1368 = vmatprep.subr.bf16.mxu1 %v1955_v46  ;;  %v132_v11 = vrot.slane %v127_v9, %v2451_v7  ;;  %v136_v12 = vrot.slane %v127_v9, %v2453_v8  ;;  %v144_v21 = vrot.slane %v127_v9, %v2459_v17 }
  0x82   :  { %1741 = vmatmul.mubr.msk.bf16.vlgmr.msra.gmra.mrb[4].mxu0 %vm249_vm0, %v110_v14 }
  0x83   :  { %336 = vmatpush1.bf16.msra.mxu0 %v1728_v23  ;;  %367 = vmatprep.mubr.bf16.mxu0 %v2323_v0 }
  0x84   :  { %337 = vmatprep.subr.bf16.mxu0 %v1737_v26  ;;  %1369 = vmatpush1.bf16.msra.mxu1 %v1960_v49 }
  0x85   :  { %1370 = vmatprep.subr.bf16.mxu1 %v1961_v50 }
  0x87   :  { %338 = vmatpush1.bf16.msra.mxu0 %v1736_v27  ;;  %v2467_v27 = vsub.s32 4, %v130_v6 }
  0x88   :  { %376 = vmatprep.subr.bf16.mxu0 %v1731_v30  ;;  %1371 = vmatpush1.bf16.msra.mxu1 %v1966_v53 }
  0x89   :  { %1372 = vmatprep.subr.bf16.mxu1 %v1967_v54 }
  0x8a   :  { %1742 = vmatmul.mubr.msk.bf16.vlgmr.msra.gmra.mrb[8].mxu0 %vm249_vm0, %v110_v14 }
  0x8b   :  { %377 = vmatpush1.bf16.msra.mxu0 %v1730_v31  ;;  %408 = vmatprep.mubr.bf16.mxu0 %v2323_v0  ;;  %v1981_v0 = vld [vmem:[#allocation10 + $0x270] ss:$8 sps:$4 sm:$0xff]  }
  0x8c   :  { %378 = vmatprep.subr.bf16.mxu0 %v1739_v32  ;;  %1373 = vmatpush1.bf16.msra.mxu1 %v1972_v57 }
  0x8d   :  { %1374 = vmatprep.subr.bf16.mxu1 %v1973_v58 }
  0x8f   :  { %379 = vmatpush1.bf16.msra.mxu0 %v1738_v33 }
  0x90   :  { %1444 = vmatprep.subr.bf16.mxu0 %v1941_v36  ;;  %1375 = vmatpush1.bf16.msra.mxu1 %v1978_v61  ;;  %v152_v36 = vrot.slane %v127_v9, %v2469_v29 }
  0x91   :  { %1376 = vmatprep.subr.bf16.mxu1 %v1979_v62 }
  0x92   :  { %1743 = vmatmul.mubr.msk.bf16.vlgmr.msra.gmra.mrb[12].mxu0 %vm249_vm0, %v110_v14  ;;  %v2457_v14 = vsub.s32 2, %v130_v6 }
  0x93   :  { %1445 = vmatpush1.bf16.msra.mxu0 %v1939_v35  ;;  %v148_v35 = vrot.slane %v127_v9, %v2467_v27 }
  0x94   :  { %1446 = vmatprep.subr.bf16.mxu0 %v1947_v39  ;;  %1377 = vmatpush1.bf16.msra.mxu1 %v1984_v1  ;;  %v140_v20 = vrot.slane %v127_v9, %v2457_v14 }
  0x95   :  { %1378 = vmatprep.subr.bf16.mxu1 %v1985_v2 }
  0x97   :  { %1447 = vmatpush1.bf16.msra.mxu0 %v1945_v40 }
  0x98   :  { %1448 = vmatprep.subr.bf16.mxu0 %v1953_v43 }
  0x9b   :  { %1449 = vmatpush1.bf16.msra.mxu0 %v1951_v44 }
  0x9c   :  { %1450 = vmatprep.subr.bf16.mxu0 %v1959_v47 }
  0x9f   :  { %1451 = vmatpush1.bf16.msra.mxu0 %v1957_v48  ;;  %v2488_v48 = vsub.s32 7, %v130_v6 }
  0xa0   :  { %1452 = vmatprep.subr.bf16.mxu0 %v1965_v51 }
  0xa1   :  { %v160_v57 = vrot.slane %v127_v9, %v2488_v48 }
  0xa3   :  { %1453 = vmatpush1.bf16.msra.mxu0 %v1963_v52 }
  0xa4   :  { %1454 = vmatprep.subr.bf16.mxu0 %v1971_v55 }
  0xa7   :  { %1455 = vmatpush1.bf16.msra.mxu0 %v1969_v56  ;;  %v156_v56 = vrot.slane %v127_v9, %v2486_v45 }
  0xa8   :  { %1456 = vmatprep.subr.bf16.mxu0 %v1977_v59 }
  0xab   :  { %1457 = vmatpush1.bf16.msra.mxu0 %v1975_v60 }
  0xac   :  { %1458 = vmatprep.subr.bf16.mxu0 %v1983_v63 }
  0xaf   :  { %1459 = vmatpush1.bf16.msra.mxu0 %v1981_v0 }
  0xb0   :  { %1460 = vmatprep.subr.bf16.mxu0 %v1989_v3 }
  0xb3   :  { %1461 = vmatpush1.bf16.msra.mxu0 %v1987_v4 }
 0x14d   :  { %v287_v10 = vpop.f32.mrb[0].mxu0 }
 0x14e   :  { %v289_v13 = vpop.f32.mrb[1].mxu0  ;;  %v288_v18 = vadd.f32 %v287_v10, %v132_v11 }
 0x14f   :  { %v291_v15 = vpop.f32.mrb[2].mxu0  ;;  %v290_v19 = vadd.f32 %v289_v13, %v136_v12 }
 0x150   :  { %v292_v16 = vpop.f32.mrb[3].mxu0  ;;  %v2463_v23 = vmax.f32 %v288_v18, 0.0  ;;  %v1990_v18 = vld [vmem:[#allocation10 + $0x80] ss:$8 sps:$4 sm:$0xff]  }
 0x151   :  { %v2465_v24 = vmax.f32 %v290_v19, 0.0  ;;  %1379 = vmatpush1.bf16.msra.mxu1 %v1990_v18  ;;  %v1991_v19 = vld [vmem:[#allocation10 + $0x94] ss:$8 sps:$4 sm:$0xff]  }
 0x152   :  { %v434_v33 = vmul.f32 %v2463_v23, %v2463_v23  ;;  %1380 = vmatprep.subr.bf16.mxu1 %v1991_v19 }
 0x153   :  { %v435_v34 = vmul.f32 %v2465_v24, %v2465_v24  ;;  %v425_v37 = vadd.f32 %v2465_v24, %v2463_v23 }
 0x155   :  { %v328_v22 = vpop.f32.mrb[4].mxu0  ;;  %v442_v41 = vadd.f32 %v435_v34, %v434_v33  ;;  %v2007_v33 = vld [vmem:[#allocation10 + $0x2b4] ss:$8 sps:$4 sm:$0xff]   ;;  %v2005_v34 = vld [vmem:[#allocation10 + $0x2b0] ss:$8 sps:$4 sm:$0xff]  }
 0x156   :  { %v329_v25 = vadd.f32 %v328_v22, %v140_v20  ;;  %v330_v26 = vpop.f32.mrb[5].mxu0  ;;  %v1993_v20 = vld [vmem:[#allocation10 + $0x290] ss:$8 sps:$4 sm:$0xff]  }
 0x157   :  { %v332_v28 = vpop.f32.mrb[6].mxu0  ;;  %v331_v31 = vadd.f32 %v330_v26, %v144_v21  ;;  %v1995_v21 = vld [vmem:[#allocation10 + $0x294] ss:$8 sps:$4 sm:$0xff]   ;;  %v1996_v22 = vld [vmem:[#allocation10 + $0x90] ss:$8 sps:$4 sm:$0xff]  }
 0x158   :  { %v2471_v30 = vmax.f32 %v329_v25, 0.0  ;;  %v333_v32 = vpop.f32.mrb[7].mxu0  ;;  %1462 = vmatprep.subr.bf16.mxu0 %v1995_v21  ;;  %1381 = vmatpush1.bf16.msra.mxu1 %v1996_v22  ;;  %v1997_v25 = vld [vmem:[#allocation10 + $0xa4] ss:$8 sps:$4 sm:$0xff]   ;;  %v1999_v28 = vld [vmem:[#allocation10 + $0x2a0] ss:$8 sps:$4 sm:$0xff]  }
 0x159   :  { %v2483_v39 = vmax.f32 %v331_v31, 0.0  ;;  %1463 = vmatpush1.bf16.msra.mxu0 %v1993_v20  ;;  %v2001_v26 = vld [vmem:[#allocation10 + $0x2a4] ss:$8 sps:$4 sm:$0xff]   ;;  %v2002_v31 = vld [vmem:[#allocation10 + $0xa0] ss:$8 sps:$4 sm:$0xff]   ;;  %1382 = vmatprep.subr.bf16.mxu1 %v1997_v25 }
 0x15a   :  { %v436_v38 = vmul.f32 %v2471_v30, %v2471_v30  ;;  %v426_v42 = vadd.f32 %v425_v37, %v2471_v30  ;;  %1464 = vmatprep.subr.bf16.mxu0 %v2001_v26  ;;  %v2003_v32 = vld [vmem:[#allocation10 + $0xb4] ss:$8 sps:$4 sm:$0xff]   ;;  %v2011_v37 = vld [vmem:[#allocation10 + $0x2c0] ss:$8 sps:$4 sm:$0xff]  }
 0x15b   :  { %v437_v50 = vmul.f32 %v2483_v39, %v2483_v39 }
 0x15c   :  { %v443_v49 = vadd.f32 %v442_v41, %v436_v38  ;;  %v427_v53 = vadd.f32 %v426_v42, %v2483_v39  ;;  %1383 = vmatpush1.bf16.msra.mxu1 %v2002_v31  ;;  %v2013_v38 = vld [vmem:[#allocation10 + $0x2c4] ss:$8 sps:$4 sm:$0xff]   ;;  %v2015_v41 = vld [vmem:[#allocation10 + $0xd4] ss:$8 sps:$4 sm:$0xff]  }
 0x15d   :  { %v369_v40 = vpop.f32.mrb[8].mxu0  ;;  %1465 = vmatpush1.bf16.msra.mxu0 %v1999_v28  ;;  %1384 = vmatprep.subr.bf16.mxu1 %v2003_v32  ;;  %v2019_v42 = vld [vmem:[#allocation10 + $0x2d4] ss:$8 sps:$4 sm:$0xff]  }
 0x15e   :  { %v370_v43 = vadd.f32 %v369_v40, %v148_v35  ;;  %v371_v44 = vpop.f32.mrb[9].mxu0  ;;  %v444_v58 = vadd.f32 %v443_v49, %v437_v50  ;;  %v2008_v35 = vld [vmem:[#allocation10 + $0xb0] ss:$8 sps:$4 sm:$0xff]   ;;  %1466 = vmatprep.subr.bf16.mxu0 %v2007_v33  ;;  %v2014_v40 = vld [vmem:[#allocation10 + $0xc0] ss:$8 sps:$4 sm:$0xff]  }
 0x15f   :  { %v372_v46 = vadd.f32 %v371_v44, %v152_v36  ;;  %v373_v47 = vpop.f32.mrb[10].mxu0  ;;  %v2009_v36 = vld [vmem:[#allocation10 + $0xc4] ss:$8 sps:$4 sm:$0xff]   ;;  %v2020_v44 = vld [vmem:[#allocation10 + $0xd0] ss:$8 sps:$4 sm:$0xff]  }
 0x160   :  { %v2492_v51 = vmax.f32 %v370_v43, 0.0  ;;  %v374_v52 = vpop.f32.mrb[11].mxu0  ;;  %1385 = vmatpush1.bf16.msra.mxu1 %v2008_v35  ;;  %v2017_v43 = vld [vmem:[#allocation10 + $0x2d0] ss:$8 sps:$4 sm:$0xff]   ;;  %v2025_v47 = vld [vmem:[#allocation10 + $0x2e4] ss:$8 sps:$4 sm:$0xff]  }
 0x161   :  { %v2497_v55 = vmax.f32 %v372_v46, 0.0  ;;  %1467 = vmatpush1.bf16.msra.mxu0 %v2005_v34  ;;  %1386 = vmatprep.subr.bf16.mxu1 %v2009_v36  ;;  %v2021_v46 = vld [vmem:[#allocation10 + $0xe4] ss:$8 sps:$4 sm:$0xff]   ;;  %v2023_v49 = vld [vmem:[#allocation10 + $0x2e0] ss:$8 sps:$4 sm:$0xff]  }
 0x162   :  { %v438_v54 = vmul.f32 %v2492_v51, %v2492_v51  ;;  %v428_v59 = vadd.f32 %v427_v53, %v2492_v51  ;;  %1468 = vmatprep.subr.bf16.mxu0 %v2013_v38  ;;  %v2026_v50 = vld [vmem:[#allocation10 + $0xe0] ss:$8 sps:$4 sm:$0xff]   ;;  %v2027_v52 = vld [vmem:[#allocation10 + $0xf4] ss:$8 sps:$4 sm:$0xff]  }
 0x163   :  { %v439_v61 = vmul.f32 %v2497_v55, %v2497_v55  ;;  %v2031_v53 = vld [vmem:[#allocation10 + $0x2f4] ss:$8 sps:$4 sm:$0xff]  }
 0x164   :  { %v445_v0 = vadd.f32 %v444_v58, %v438_v54  ;;  %v429_v5 = vadd.f32 %v428_v59, %v2497_v55  ;;  %1387 = vmatpush1.bf16.msra.mxu1 %v2014_v40  ;;  %v2029_v54 = vld [vmem:[#allocation10 + $0x2f0] ss:$8 sps:$4 sm:$0xff]   ;;  %v2038_v58 = vld [vmem:[#allocation10 + $0x304] ss:$8 sps:$4 sm:$0xff]  }
 0x165   :  { %v410_v60 = vpop.f32.mrb[12].mxu0  ;;  %1469 = vmatpush1.bf16.msra.mxu0 %v2011_v37  ;;  %1388 = vmatprep.subr.bf16.mxu1 %v2015_v41 }
 0x166   :  { %v411_v62 = vadd.f32 %v410_v60, %v156_v56  ;;  %v412_v63 = vpop.f32.mrb[13].mxu0  ;;  %v446_v11 = vadd.f32 %v445_v0, %v439_v61  ;;  %1470 = vmatprep.subr.bf16.mxu0 %v2019_v42  ;;  %v2032_v56 = vld [vmem:[#allocation10 + $0xf0] ss:$8 sps:$4 sm:$0xff]  }
 0x167   :  { %v413_v1 = vadd.f32 %v412_v63, %v160_v57  ;;  %v414_v2 = vpop.f32.mrb[14].mxu0  ;;  %v2035_v57 = vld [vmem:[#allocation10 + $0x104] ss:$8 sps:$4 sm:$0xff]  }
 0x168   :  { %v2504_v3 = vmax.f32 %v411_v62, 0.0  ;;  %v415_v4 = vpop.f32.mrb[15].mxu0  ;;  %1389 = vmatpush1.bf16.msra.mxu1 %v2020_v44 }
 0x169   :  { %v2507_v6 = vmax.f32 %v413_v1, 0.0  ;;  %1471 = vmatpush1.bf16.msra.mxu0 %v2017_v43  ;;  %1390 = vmatprep.subr.bf16.mxu1 %v2021_v46  ;;  %v474_v4 = vld [vmem:[%s2573_s3] sm:$0xff] }
 0x16a   :  { %v430_v9 = vadd.f32 %v429_v5, %v2504_v3  ;;  %v440_v10 = vmul.f32 %v2504_v3, %v2504_v3  ;;  %1472 = vmatprep.subr.bf16.mxu0 %v2025_v47  ;;  %v524_v5 = vld [vmem:[#allocation8] sm:$0xff]  ;;  %v507_v18 = vrot.slane %v474_v4, %v2488_v48 }
 0x16b   :  { %v441_v13 = vmul.f32 %v2507_v6, %v2507_v6  ;;  %v533_v19 = vrot.slane %v524_v5, %v2453_v8  ;;  %v549_v20 = vrot.slane %v524_v5, %v2469_v29  ;;  %v529_v21 = vrot.slane %v524_v5, %v2451_v7 }
 0x16c   :  { %v431_v12 = vadd.f32 %v430_v9, %v2507_v6  ;;  %v447_v15 = vadd.f32 %v446_v11, %v440_v10  ;;  %1391 = vmatpush1.bf16.msra.mxu1 %v2026_v50  ;;  %v487_v9 = vrot.slane %v474_v4, %v2457_v14  ;;  %v495_v10 = vrot.slane %v474_v4, %v2467_v27 }
 0x16d   :  { %1473 = vmatpush1.bf16.msra.mxu0 %v2023_v49  ;;  %1392 = vmatprep.subr.bf16.mxu1 %v2027_v52  ;;  %v503_v11 = vrot.slane %v474_v4, %v2486_v45  ;;  %v545_v22 = vrot.slane %v524_v5, %v2467_v27  ;;  %v541_v25 = vrot.slane %v524_v5, %v2459_v17 }
 0x16e   :  { %432 = vadd.xlane.f32.xlu0 %v431_v12  ;;  %v448_v16 = vadd.f32 %v447_v15, %v441_v13  ;;  %1474 = vmatprep.subr.bf16.mxu0 %v2031_v53  ;;  %v483_v12 = vrot.slane %v474_v4, %v2453_v8  ;;  %v499_v13 = vrot.slane %v474_v4, %v2469_v29 }
 0x16f   :  { %v479_v15 = vrot.slane %v474_v4, %v2451_v7  ;;  %v557_v26 = vrot.slane %v524_v5, %v2488_v48  ;;  %v537_v28 = vrot.slane %v524_v5, %v2457_v14  ;;  %v553_v31 = vrot.slane %v524_v5, %v2486_v45  ;;  %v2047_v5 = vld [vmem:[#allocation10 + $0x124] ss:$8 sps:$4 sm:$0xff]  }
 0x170   :  { %1393 = vmatpush1.bf16.msra.mxu1 %v2032_v56 }
 0x171   :  { %1475 = vmatpush1.bf16.msra.mxu0 %v2029_v54  ;;  %1403 = vmatprep.subr.bf16.mxu1 %v2035_v57  ;;  %v2033_v57 = vld [vmem:[#allocation10 + $0x100] ss:$8 sps:$4 sm:$0xff]  }
 0x172   :  { %449 = vadd.xlane.f32.xlu0 %v448_v16  ;;  %1485 = vmatprep.subr.bf16.mxu0 %v2038_v58  ;;  %v491_v16 = vrot.slane %v474_v4, %v2459_v17  ;;  %v2042_v4 = vld [vmem:[#allocation10 + $0x310] ss:$8 sps:$4 sm:$0xff]  }
 0x1fb   :  { %v433_v59 = vpop.xlane.xlu0 %432 }
 0x1fc   :  { %v451_v60 = vmul.f32 0.0009765625, %v433_v59  ;;  %v2036_v59 = vld [vmem:[#allocation10 + $0x300] ss:$8 sps:$4 sm:$0xff]  }
 0x1fe   :  { %v453_v62 = vmul.f32 %v451_v60, %v451_v60  ;;  %v457_v32 = vsub.f32 %v2465_v24, %v451_v60  ;;  %v461_v33 = vsub.f32 %v2497_v55, %v451_v60  ;;  %v456_v34 = vsub.f32 %v2463_v23, %v451_v60 }
 0x1ff   :  { %v450_v61 = vpop.xlane.xlu0 %449  ;;  %v460_v29 = vsub.f32 %v2492_v51, %v451_v60  ;;  %v459_v36 = vsub.f32 %v2483_v39, %v451_v60  ;;  %v463_v27 = vsub.f32 %v2507_v6, %v451_v60  ;;  %v458_v17 = vsub.f32 %v2471_v30, %v451_v60 }
 0x200   :  { %v452_v63 = vmul.f32 0.0009765625, %v450_v61  ;;  %v462_v48 = vsub.f32 %v2504_v3, %v451_v60 }
 0x202   :  { %v454_v0 = vsub.f32 %v452_v63, %v453_v62  ;;  %v2041_v62 = vld [vmem:[#allocation10 + $0x114] ss:$8 sps:$4 sm:$0xff]  }
 0x203   :  { %v2044_v63 = vld [vmem:[#allocation10 + $0x314] ss:$8 sps:$4 sm:$0xff]  }
 0x204   :  { %v455_v1 = vmax.f32 %v454_v0, 0.0 }
 0x206   :  { %v464_v2 = vadd.f32 1e-05, %v455_v1 }
 0x208   :  { %2145 = vrsqrt.f32 %v464_v2  ;;  %v2039_v2 = vld [vmem:[#allocation10 + $0x110] ss:$8 sps:$4 sm:$0xff]  }
 0x212   :  { %v2146_v35 = vpop.eup %2145 }
 0x213   :  { %v467_v14 = vmul.f32 %v2146_v35, %v457_v32  ;;  %v471_v37 = vmul.f32 %v2146_v35, %v461_v33  ;;  %v466_v45 = vmul.f32 %v2146_v35, %v456_v34  ;;  %v470_v38 = vmul.f32 %v2146_v35, %v460_v29  ;;  %v2074_v32 = vld [vmem:[#allocation10 + $0x364] ss:$8 sps:$4 sm:$0xff]   ;;  %v2069_v33 = vld [vmem:[#allocation10 + $0x160] ss:$8 sps:$4 sm:$0xff]   ;;  %v2077_v29 = vld [vmem:[#allocation10 + $0x174] ss:$8 sps:$4 sm:$0xff]  }
 0x214   :  { %v469_v24 = vmul.f32 %v2146_v35, %v459_v36  ;;  %v473_v40 = vmul.f32 %v2146_v35, %v463_v27  ;;  %v468_v55 = vmul.f32 %v2146_v35, %v458_v17  ;;  %v472_v41 = vmul.f32 %v2146_v35, %v462_v48  ;;  %v2072_v34 = vld [vmem:[#allocation10 + $0x360] ss:$8 sps:$4 sm:$0xff]   ;;  %v2080_v35 = vld [vmem:[#allocation10 + $0x374] ss:$8 sps:$4 sm:$0xff]   ;;  %v2075_v36 = vld [vmem:[#allocation10 + $0x170] ss:$8 sps:$4 sm:$0xff]  }
 0x215   :  { %v517_v23 = vmul.f32 %v483_v12, %v467_v14  ;;  %v521_v42 = vmul.f32 %v499_v13, %v471_v37  ;;  %v516_v51 = vmul.f32 %v479_v15, %v466_v45  ;;  %v520_v43 = vmul.f32 %v495_v10, %v470_v38  ;;  %v2045_v10 = vld [vmem:[#allocation10 + $0x120] ss:$8 sps:$4 sm:$0xff]   ;;  %v2053_v12 = vld [vmem:[#allocation10 + $0x134] ss:$8 sps:$4 sm:$0xff]   ;;  %v2051_v15 = vld [vmem:[#allocation10 + $0x130] ss:$8 sps:$4 sm:$0xff]  }
 0x216   :  { %v519_v44 = vmul.f32 %v491_v16, %v469_v24  ;;  %v523_v39 = vmul.f32 %v507_v18, %v473_v40  ;;  %v518_v46 = vmul.f32 %v487_v9, %v468_v55  ;;  %v522_v6 = vmul.f32 %v503_v11, %v472_v41  ;;  %v2050_v9 = vld [vmem:[#allocation10 + $0x324] ss:$8 sps:$4 sm:$0xff]   ;;  %v2048_v11 = vld [vmem:[#allocation10 + $0x320] ss:$8 sps:$4 sm:$0xff]   ;;  %v2056_v13 = vld [vmem:[#allocation10 + $0x334] ss:$8 sps:$4 sm:$0xff]  }
 0x217   :  { %v567_v47 = vadd.f32 %v533_v19, %v517_v23  ;;  %v571_v30 = vadd.f32 %v549_v20, %v521_v42  ;;  %v566_v49 = vadd.f32 %v529_v21, %v516_v51  ;;  %v570_v3 = vadd.f32 %v545_v22, %v520_v43  ;;  %v2054_v16 = vld [vmem:[#allocation10 + $0x330] ss:$8 sps:$4 sm:$0xff]   ;;  %v2059_v18 = vld [vmem:[#allocation10 + $0x144] ss:$8 sps:$4 sm:$0xff]   ;;  %v2057_v20 = vld [vmem:[#allocation10 + $0x140] ss:$8 sps:$4 sm:$0xff]  }
 0x218   :  { %v569_v50 = vadd.f32 %v541_v25, %v519_v44  ;;  %v573_v52 = vadd.f32 %v557_v26, %v523_v39  ;;  %v2542_v53 = vadd.f32 %v537_v28, %v518_v46  ;;  %v2544_v54 = vadd.f32 %v553_v31, %v522_v6  ;;  %v2062_v19 = vld [vmem:[#allocation10 + $0x344] ss:$8 sps:$4 sm:$0xff]   ;;  %v2060_v21 = vld [vmem:[#allocation10 + $0x340] ss:$8 sps:$4 sm:$0xff]   ;;  %v2065_v22 = vld [vmem:[#allocation10 + $0x154] ss:$8 sps:$4 sm:$0xff]  }
 0x219   :  { %v575_v56 = vpack.c.bf16 %v567_v47, %v567_v47  ;;  %v579_v58 = vpack.c.bf16 %v571_v30, %v571_v30  ;;  %v574_v60 = vpack.c.bf16 %v566_v49, %v566_v49  ;;  %v578_v61 = vpack.c.bf16 %v570_v3, %v570_v3  ;;  %v2068_v25 = vld [vmem:[#allocation10 + $0x354] ss:$8 sps:$4 sm:$0xff]   ;;  %v2063_v26 = vld [vmem:[#allocation10 + $0x150] ss:$8 sps:$4 sm:$0xff]   ;;  %v2071_v31 = vld [vmem:[#allocation10 + $0x164] ss:$8 sps:$4 sm:$0xff]  }
 0x21a   :  { %v577_v0 = vpack.c.bf16 %v569_v50, %v569_v50  ;;  %v581_v1 = vpack.c.bf16 %v573_v52, %v573_v52  ;;  %v2066_v28 = vld [vmem:[#allocation10 + $0x350] ss:$8 sps:$4 sm:$0xff]   ;;  %v2083_v17 = vld [vmem:[#allocation10 + $0x184] ss:$8 sps:$4 sm:$0xff]   ;;  %v2081_v14 = vld [vmem:[#allocation10 + $0x180] ss:$8 sps:$4 sm:$0xff]  }
 0x21b   :  { %1394 = vmatprep.mubr.bf16.mxu1 %v575_v56  ;;  %1476 = vmatprep.mubr.bf16.mxu0 %v579_v58  ;;  %v2078_v27 = vld [vmem:[#allocation10 + $0x370] ss:$8 sps:$4 sm:$0xff]   ;;  %v2086_v48 = vld [vmem:[#allocation10 + $0x384] ss:$8 sps:$4 sm:$0xff]   ;;  %v2084_v37 = vld [vmem:[#allocation10 + $0x380] ss:$8 sps:$4 sm:$0xff]  }
 0x21c   :  { %1395 = vmatmul.mubr.bf16.vlgmr.msra.gmra.mrb[0].mxu1 %v574_v60  ;;  %1477 = vmatmul.mubr.bf16.vlgmr.msra.gmra.mrb[16].mxu0 %v578_v61  ;;  %v2089_v45 = vld [vmem:[#allocation10 + $0x194] ss:$8 sps:$4 sm:$0xff]   ;;  %v2087_v24 = vld [vmem:[#allocation10 + $0x190] ss:$8 sps:$4 sm:$0xff]   ;;  %v2095_v55 = vld [vmem:[#allocation10 + $0x1a4] ss:$8 sps:$4 sm:$0xff]  }
 0x21d   :  { %1404 = vmatpush1.bf16.msra.mxu1 %v2033_v57  ;;  %1486 = vmatpush1.bf16.msra.mxu0 %v2036_v59  ;;  %v2092_v38 = vld [vmem:[#allocation10 + $0x394] ss:$8 sps:$4 sm:$0xff]   ;;  %v2090_v40 = vld [vmem:[#allocation10 + $0x390] ss:$8 sps:$4 sm:$0xff]   ;;  %v2098_v41 = vld [vmem:[#allocation10 + $0x3a4] ss:$8 sps:$4 sm:$0xff]  }
 0x21e   :  { %1435 = vmatprep.mubr.bf16.mxu1 %v577_v0  ;;  %1517 = vmatprep.mubr.bf16.mxu0 %v581_v1  ;;  %v2093_v23 = vld [vmem:[#allocation10 + $0x1a0] ss:$8 sps:$4 sm:$0xff]   ;;  %v2101_v51 = vld [vmem:[#allocation10 + $0x1b4] ss:$8 sps:$4 sm:$0xff]   ;;  %v2099_v44 = vld [vmem:[#allocation10 + $0x1b0] ss:$8 sps:$4 sm:$0xff]  }
 0x21f   :  { %1405 = vmatprep.subr.bf16.mxu1 %v2041_v62  ;;  %1487 = vmatprep.subr.bf16.mxu0 %v2044_v63  ;;  %v2096_v42 = vld [vmem:[#allocation10 + $0x3a0] ss:$8 sps:$4 sm:$0xff]   ;;  %v2104_v43 = vld [vmem:[#allocation10 + $0x3b4] ss:$8 sps:$4 sm:$0xff]   ;;  %v2102_v39 = vld [vmem:[#allocation10 + $0x3b0] ss:$8 sps:$4 sm:$0xff]  }
 0x220   :  { %v2107_v46 = vld [vmem:[#allocation10 + $0x1c4] ss:$8 sps:$4 sm:$0xff]   ;;  %v2105_v47 = vld [vmem:[#allocation10 + $0x1c0] ss:$8 sps:$4 sm:$0xff]   ;;  %v2113_v49 = vld [vmem:[#allocation10 + $0x1d4] ss:$8 sps:$4 sm:$0xff]  }
 0x221   :  { %1406 = vmatpush1.bf16.msra.mxu1 %v2039_v2  ;;  %1488 = vmatpush1.bf16.msra.mxu0 %v2042_v4  ;;  %v2110_v6 = vld [vmem:[#allocation10 + $0x3c4] ss:$8 sps:$4 sm:$0xff]   ;;  %v2108_v30 = vld [vmem:[#allocation10 + $0x3c0] ss:$8 sps:$4 sm:$0xff]   ;;  %v2116_v3 = vld [vmem:[#allocation10 + $0x3d4] ss:$8 sps:$4 sm:$0xff]   ;;  %v576_v2 = vpack.c.bf16 %v2542_v53, %v2542_v53  ;;  %v580_v4 = vpack.c.bf16 %v2544_v54, %v2544_v54 }
 0x222   :  { %1407 = vmatprep.subr.bf16.mxu1 %v2047_v5  ;;  %1489 = vmatprep.subr.bf16.mxu0 %v2050_v9  ;;  %v2111_v50 = vld [vmem:[#allocation10 + $0x1d0] ss:$8 sps:$4 sm:$0xff]   ;;  %v2119_v56 = vld [vmem:[#allocation10 + $0x1e4] ss:$8 sps:$4 sm:$0xff]   ;;  %v2117_v58 = vld [vmem:[#allocation10 + $0x1e0] ss:$8 sps:$4 sm:$0xff]  }
 0x223   :  { %v2114_v52 = vld [vmem:[#allocation10 + $0x3d0] ss:$8 sps:$4 sm:$0xff]   ;;  %v2122_v57 = vld [vmem:[#allocation10 + $0x3e4] ss:$8 sps:$4 sm:$0xff]   ;;  %v2120_v59 = vld [vmem:[#allocation10 + $0x3e0] ss:$8 sps:$4 sm:$0xff]  }
 0x224   :  { %v2125_v60 = vld [vmem:[#allocation10 + $0x1f4] ss:$8 sps:$4 sm:$0xff]   ;;  %v2123_v62 = vld [vmem:[#allocation10 + $0x1f0] ss:$8 sps:$4 sm:$0xff]   ;;  %v2129_v0 = vld [vmem:[#allocation11 + $0x40] sm:$0xff]  }
 0x225   :  { %1408 = vmatpush1.bf16.msra.mxu1 %v2045_v10  ;;  %1490 = vmatpush1.bf16.msra.mxu0 %v2048_v11  ;;  %v2128_v61 = vld [vmem:[#allocation10 + $0x3f4] ss:$8 sps:$4 sm:$0xff]   ;;  %v2126_v63 = vld [vmem:[#allocation10 + $0x3f0] ss:$8 sps:$4 sm:$0xff]   ;;  %v2130_v1 = vld [vmem:[#allocation11] sm:$0xff]  }
 0x226   :  { %1409 = vmatprep.subr.bf16.mxu1 %v2053_v12  ;;  %1491 = vmatprep.subr.bf16.mxu0 %v2056_v13  ;;  %v2131_v5 = vld [vmem:[#allocation11 + $0x48] sm:$0xff]   ;;  %v2133_v10 = vld [vmem:[#allocation11 + $0x50] sm:$0xff]   ;;  %v2135_v12 = vld [vmem:[#allocation11 + $0x58] sm:$0xff]  }
 0x227   :  { %v2132_v9 = vld [vmem:[#allocation11 + $0x8] sm:$0xff]   ;;  %v2134_v11 = vld [vmem:[#allocation11 + $0x10] sm:$0xff]   ;;  %v2136_v13 = vld [vmem:[#allocation11 + $0x18] sm:$0xff]  }
 0x228   :  { %v2138_v53 = vld [vmem:[#allocation11 + $0x20] sm:$0xff]   ;;  %v2139_v54 = vld [vmem:[#allocation11 + $0x68] sm:$0xff]  }
 0x229   :  { %1410 = vmatpush1.bf16.msra.mxu1 %v2051_v15  ;;  %1492 = vmatpush1.bf16.msra.mxu0 %v2054_v16  ;;  %v2137_v15 = vld [vmem:[#allocation11 + $0x60] sm:$0xff]   ;;  %v2140_v16 = vld [vmem:[#allocation11 + $0x28] sm:$0xff]  }
 0x22a   :  { %1411 = vmatprep.subr.bf16.mxu1 %v2059_v18  ;;  %1493 = vmatprep.subr.bf16.mxu0 %v2062_v19  ;;  %v2141_v18 = vld [vmem:[#allocation11 + $0x70] sm:$0xff]  }
 0x22b   :  { %v2142_v19 = vld [vmem:[#allocation11 + $0x30] sm:$0xff]  }
 0x22d   :  { %1412 = vmatpush1.bf16.msra.mxu1 %v2057_v20  ;;  %1494 = vmatpush1.bf16.msra.mxu0 %v2060_v21  ;;  %v2143_v20 = vld [vmem:[#allocation11 + $0x78] sm:$0xff]  }
 0x22e   :  { %1413 = vmatprep.subr.bf16.mxu1 %v2065_v22  ;;  %1495 = vmatprep.subr.bf16.mxu0 %v2068_v25  ;;  %v2144_v21 = vld [vmem:[#allocation11 + $0x38] sm:$0xff]   ;;  %v710_v22 = vld [vmem:[%s2576_s6] sm:$0x3] }
 0x22f   :  { %v715_v25 = vrot.slane %v710_v22, %v2451_v7 }
 0x231   :  { %1414 = vmatpush1.bf16.msra.mxu1 %v2063_v26  ;;  %1496 = vmatpush1.bf16.msra.mxu0 %v2066_v28  ;;  %v719_v26 = vrot.slane %v710_v22, %v2453_v8  ;;  %v1872_v8 = vld [vmem:[%s2578_s8] ss:$0 sm:$0xff] }
 0x232   :  { %1415 = vmatprep.subr.bf16.mxu1 %v2071_v31  ;;  %1497 = vmatprep.subr.bf16.mxu0 %v2074_v32 }
 0x235   :  { %1416 = vmatpush1.bf16.msra.mxu1 %v2069_v33  ;;  %1498 = vmatpush1.bf16.msra.mxu0 %v2072_v34 }
 0x236   :  { %1417 = vmatprep.subr.bf16.mxu1 %v2077_v29  ;;  %1499 = vmatprep.subr.bf16.mxu0 %v2080_v35 }
 0x239   :  { %1418 = vmatpush1.bf16.msra.mxu1 %v2075_v36  ;;  %1500 = vmatpush1.bf16.msra.mxu0 %v2078_v27 }
 0x23a   :  { %1419 = vmatprep.subr.bf16.mxu1 %v2083_v17  ;;  %1501 = vmatprep.subr.bf16.mxu0 %v2086_v48 }
 0x23d   :  { %1420 = vmatpush1.bf16.msra.mxu1 %v2081_v14  ;;  %1502 = vmatpush1.bf16.msra.mxu0 %v2084_v37 }
 0x23e   :  { %1421 = vmatprep.subr.bf16.mxu1 %v2089_v45  ;;  %1503 = vmatprep.subr.bf16.mxu0 %v2092_v38 }
 0x241   :  { %1422 = vmatpush1.bf16.msra.mxu1 %v2087_v24  ;;  %1504 = vmatpush1.bf16.msra.mxu0 %v2090_v40 }
 0x242   :  { %1423 = vmatprep.subr.bf16.mxu1 %v2095_v55  ;;  %1505 = vmatprep.subr.bf16.mxu0 %v2098_v41 }
 0x245   :  { %1424 = vmatpush1.bf16.msra.mxu1 %v2093_v23  ;;  %1506 = vmatpush1.bf16.msra.mxu0 %v2096_v42 }
 0x246   :  { %1425 = vmatprep.subr.bf16.mxu1 %v2101_v51  ;;  %1507 = vmatprep.subr.bf16.mxu0 %v2104_v43 }
 0x249   :  { %1426 = vmatpush1.bf16.msra.mxu1 %v2099_v44  ;;  %1508 = vmatpush1.bf16.msra.mxu0 %v2102_v39 }
 0x24a   :  { %1427 = vmatprep.subr.bf16.mxu1 %v2107_v46  ;;  %1509 = vmatprep.subr.bf16.mxu0 %v2110_v6 }
 0x24d   :  { %1428 = vmatpush1.bf16.msra.mxu1 %v2105_v47  ;;  %1510 = vmatpush1.bf16.msra.mxu0 %v2108_v30 }
 0x24e   :  { %1429 = vmatprep.subr.bf16.mxu1 %v2113_v49  ;;  %1511 = vmatprep.subr.bf16.mxu0 %v2116_v3 }
 0x251   :  { %1430 = vmatpush1.bf16.msra.mxu1 %v2111_v50  ;;  %1512 = vmatpush1.bf16.msra.mxu0 %v2114_v52 }
 0x252   :  { %1431 = vmatprep.subr.bf16.mxu1 %v2119_v56  ;;  %1513 = vmatprep.subr.bf16.mxu0 %v2122_v57 }
 0x255   :  { %1432 = vmatpush1.bf16.msra.mxu1 %v2117_v58  ;;  %1514 = vmatpush1.bf16.msra.mxu0 %v2120_v59 }
 0x256   :  { %1433 = vmatprep.subr.bf16.mxu1 %v2125_v60  ;;  %1515 = vmatprep.subr.bf16.mxu0 %v2128_v61 }
 0x259   :  { %1434 = vmatpush1.bf16.msra.mxu1 %v2123_v62  ;;  %1516 = vmatpush1.bf16.msra.mxu0 %v2126_v63 }
 0x25a   :  { %1889 = vmatprep.subr.bf16.mxu1 %v2129_v0 }
 0x25c   :  { %1436 = vmatmul.mubr.bf16.vlgmr.msra.gmra.mrb[0].mxu1 %v576_v2  ;;  %1518 = vmatmul.mubr.bf16.vlgmr.msra.gmra.mrb[16].mxu0 %v580_v4 }
 0x25d   :  { %1890 = vmatpush3.bf16.msra.mxu1 %v2130_v1 }
 0x25e   :  { %1891 = vmatprep.subr.bf16.mxu1 %v2131_v5 }
 0x261   :  { %1892 = vmatpush3.bf16.msra.mxu1 %v2132_v9 }
 0x262   :  { %1893 = vmatprep.subr.bf16.mxu1 %v2133_v10 }
 0x265   :  { %1894 = vmatpush3.bf16.msra.mxu1 %v2134_v11 }
 0x266   :  { %1895 = vmatprep.subr.bf16.mxu1 %v2135_v12 }
 0x269   :  { %1896 = vmatpush3.bf16.msra.mxu1 %v2136_v13 }
 0x26a   :  { %1897 = vmatprep.subr.bf16.mxu1 %v2137_v15 }
 0x26d   :  { %1898 = vmatpush3.bf16.msra.mxu1 %v2138_v53 }
 0x26e   :  { %1899 = vmatprep.subr.bf16.mxu1 %v2139_v54 }
 0x271   :  { %1900 = vmatpush3.bf16.msra.mxu1 %v2140_v16 }
 0x272   :  { %1901 = vmatprep.subr.bf16.mxu1 %v2141_v18 }
 0x275   :  { %1902 = vmatpush3.bf16.msra.mxu1 %v2142_v19 }
 0x276   :  { %1903 = vmatprep.subr.bf16.mxu1 %v2143_v20 }
 0x279   :  { %1904 = vmatpush3.bf16.msra.mxu1 %v2144_v21 }
 0x32f   :  { %v1437_v28 = vpop.f32.mrb[0].mxu1  ;;  %v1519_v31 = vpop.f32.mrb[16].mxu0 }
 0x330   :  { %v1911_v32 = vadd.f32 %v1437_v28, %v715_v25  ;;  %v1439_v33 = vpop.f32.mrb[1].mxu1  ;;  %v1521_v34 = vpop.f32.mrb[17].mxu0 }
 0x331   :  { %v1913_v29 = vadd.f32 %v1439_v33, %v719_v26  ;;  %v1441_v35 = vpop.f32.mrb[2].mxu1  ;;  %v1523_v36 = vpop.f32.mrb[18].mxu0 }
 0x332   :  { %v1912_v27 = vadd.f32 %v1911_v32, %v1519_v31  ;;  %v1442_v17 = vpop.f32.mrb[3].mxu1  ;;  %v1524_v48 = vpop.f32.mrb[19].mxu0 }
 0x333   :  { %v1914_v14 = vadd.f32 %v1913_v29, %v1521_v34 }
 0x334   :  { %v1526_v37 = vmax.f32 %v1912_v27, 0.0 }
 0x335   :  { %v1527_v45 = vmax.f32 %v1914_v14, 0.0 }
 0x336   :  { %v1528_v24 = vpack.c.bf16 %v1526_v37, %v1526_v37 }
 0x337   :  { %v1529_v38 = vpack.c.bf16 %v1527_v45, %v1527_v45 }
 0x339   :  { %1697 = vmatprep.mubr.bf16.mxu1 %v1529_v38 }
 0x33a   :  { %1698 = vmatmul.mubr.bf16.vlgmr.msra.gmra.mrb[4].mxu1 %v1528_v24 }
 0x40d   :  { %v1905_v7 = vpop.f32.mrb[4].mxu1 }
 0x40e   :  { %v1906_v40 = vpop.f32.mrb[5].mxu1 }
 0x40f   :  { %v1907_v55 = vadd.f32 %v1906_v40, %v1905_v7  ;;  %v1908_v41 = vpop.f32.mrb[6].mxu1 }
 0x410   :  { %v1909_v23 = vpop.f32.mrb[7].mxu1 }
 0x411   :  { %v1700_v42 = vadd.f32 %v1907_v55, %v1872_v8 }
 0x413   :  { %1705 = vst [vmem:[#allocation13] sm:$0xff] %v1700_v42 }
 0x414   :  { %2290 = shalt.err (!%p2287_p10)
}
 0x415   :  { %s2291_s8 = scalar_lea.hbm %s2579_s9, 128 }
 0x416   :  { %p2292_p11 = scmp.ne.s32.totalorder %s2579_s9, %s2291_s8  ;;  %p2295_p12 = scmp.lt.u32.totalorder %s2291_s8, %s2579_s9 }
 0x418   :  { %p2297_p13 = pnand %p2295_p12, %p2292_p11 }
 0x41a   :  { %2300 = shalt.err (!%p2297_p13)
}
 0x41b   :  { %1715 = dma.vmem_to_hbm [thread:$0]  %s1713_s19, 128, %s2579_s9, [#allocation4]  }
 0x41c   :  { %2309 = dma.done.wait [#allocation4], 128  }
 0x41d   :  { %2310 = vsyncadd [#allocation4], 4294967168 }
 0x41e   :  { %1719 = vsyncpa [#allocation3], 1 }
 0x41f   :  { %1720 = vsyncpa [#allocation6], 1 }
 0x420   :  { %1721 = vsyncpa [#allocation9], 1 }
 0x421   :  { %1722 = vsyncpa [#allocation12], 1 }
 0x422   :  { %1723 = vsyncpa [#allocation4], 1 }

</bundles_post_ra>
